<compile_context>
chip_gen: v7x
topology: tpu7x:2x2x1
jax: 0.10.0
libtpu: 0.0.40
codegen_flags: <defaults>
</compile_context>

<pallas_src>
import jax
import jax.numpy as jnp
from jax.experimental import pallas as pl
from jax.experimental.pallas import tpu as pltpu


# ---------------------------------------------------------------------------
# Kernel body
# ---------------------------------------------------------------------------
def _mlp_block_kernel(x_ref, *rest_refs):
    """rest_refs = (w_0, ..., w_{depth-1}, o_ref).

    x_ref : (1, C_in , T) tile — channels on sublanes, pixels on lanes (f32)
    w_i   : (C_out, C_prev) full weight matrices (PyTorch conv layout, squeezed)
    o_ref : (1, C_out, T)
    """
    w_refs = rest_refs[:-1]
    o_ref = rest_refs[-1]

    out = x_ref[0]  # (C_in, T), input dtype
    for w_ref in w_refs:  # depth is small & static -> unrolled at trace time
        # Cast activations to the (bf16) weight dtype in VMEM; accumulate f32.
        out = jnp.dot(w_ref[...], out.astype(w_ref.dtype),
                      preferred_element_type=jnp.float32)
        out = jnp.maximum(out, 0.0)  # ReLU after each layer
    o_ref[0] = out.astype(o_ref.dtype)


# ---------------------------------------------------------------------------
# Tiling / VMEM sizing helpers
# ---------------------------------------------------------------------------
def _round_up(x, m):
    return (x + m - 1) // m * m


def _vmem_capacity_bytes():
    try:
        return int(pltpu.get_tpu_info().vmem_capacity_bytes)
    except Exception:
        return 64 << 20  # conservative: v7x per-TensorCore VMEM


def _pick_tile_hw(hw_pad, batch, c_in, c_out, depth, w_bytes,
                  x_itemsize, out_itemsize, vmem_budget,
                  min_steps=8, max_tile=4096):
    """Largest multiple-of-128 divisor of hw_pad that fits the VMEM budget,
    preferring tiles that still give >= min_steps total grid steps."""

    def need(t):
        return (2 * c_in * t * x_itemsize          # x, double-buffered
                + 2 * c_out * t * out_itemsize     # out, double-buffered
                + (depth + 1) * c_out * t * 4      # f32 intermediates (scratch)
                + w_bytes)                         # resident weights

    cands = [t for t in range(128, min(hw_pad, max_tile) + 1, 128)
             if hw_pad % t == 0]
    if not cands:            # hw_pad is always a multiple of 128, but be safe
        cands = [128]
    fitting = [t for t in cands if need(t) <= vmem_budget] or [cands[0]]
    good = [t for t in fitting if batch * (hw_pad // t) >= min_steps]
    return max(good) if good else min(fitting)


# ---------------------------------------------------------------------------
# Wrapper
# ---------------------------------------------------------------------------
def mlp_block_pallas(x_nchw, weights, *, compute_dtype=jnp.bfloat16,
                     out_dtype=jnp.float32, min_grid_steps=8,
                     single_buffer_weights=True):
    """Apply MlpBlock to NCHW input using a Pallas kernel.

    x_nchw        : (B, C_in, H, W) float32
    weights       : list of (C_out, C_prev) float32 matrices (PyTorch layout)
    compute_dtype : matmul operand dtype (bf16 default; accumulation is f32)
    out_dtype     : output dtype (f32 default; bf16 halves HBM writeback)
    returns       : (B, C_out, H, W) out_dtype
    """
    B, C_in, H, W = x_nchw.shape
    C_out = weights[-1].shape[0]
    depth = len(weights)
    HW = H * W
    HW_pad = _round_up(HW, 128)

    # Free reshape NCHW -> (B, C, HW). x keeps its dtype; cast happens in-kernel.
    x = x_nchw.reshape(B, C_in, HW)
    if HW_pad != HW:
        # Pad pixels so output stores are lane-dense (unmasked vst); padding is
        # sliced off after the call (matmul columns are independent).
        x = jnp.pad(x, ((0, 0), (0, 0), (0, HW_pad - HW)))

    # Weights are tiny: cast in the wrapper, keep resident in VMEM.
    ws = [w.astype(compute_dtype) for w in weights]
    w_bytes = sum(w.size * w.dtype.itemsize for w in ws)

    x_itemsize = x.dtype.itemsize
    out_itemsize = jnp.dtype(out_dtype).itemsize

    # Per-generation VMEM sizing: ~100 MiB scoped limit on v5e/v6e (128 MiB
    # physical), ~48 MiB on v7x (64 MiB physical), with headroom.
    vmem_cap = _vmem_capacity_bytes()
    vmem_limit = int(min(vmem_cap - (16 << 20), 100 << 20))
    vmem_limit = max(vmem_limit, 32 << 20)
    vmem_budget = vmem_limit - (4 << 20)

    tile_hw = _pick_tile_hw(HW_pad, B, C_in, C_out, depth, w_bytes,
                            x_itemsize, out_itemsize, vmem_budget,
                            min_steps=min_grid_steps)
    grid = (B, HW_pad // tile_hw)

    flops = 2 * B * HW_pad * sum(int(w.shape[0]) * int(w.shape[1]) for w in ws)
    bytes_accessed = (x.size * x_itemsize
                      + B * C_out * HW_pad * out_itemsize
                      + w_bytes)

    x_spec = pl.BlockSpec((1, C_in, tile_hw), lambda b, t: (b, 0, t))
    out_spec = pl.BlockSpec((1, C_out, tile_hw), lambda b, t: (b, 0, t))

    def weight_spec(shape, single_buffer):
        # Constant index_map -> weight block never changes; single-buffer it to
        # reclaim sum(|W|) of VMEM (matters for realistic widths on v7x).
        if single_buffer and hasattr(pl, "Buffered"):
            try:
                return pl.BlockSpec(shape, lambda b, t: (0, 0),
                                    pipeline_mode=pl.Buffered(1))
            except TypeError:
                pass
        return pl.BlockSpec(shape, lambda b, t: (0, 0))

    def run(single_buffer):
        in_specs = [x_spec] + [weight_spec(w.shape, single_buffer) for w in ws]
        return pl.pallas_call(
            _mlp_block_kernel,
            out_shape=jax.ShapeDtypeStruct((B, C_out, HW_pad), out_dtype),
            grid_spec=pltpu.PrefetchScalarGridSpec(
                num_scalar_prefetch=0,
                grid=grid,
                in_specs=in_specs,
                out_specs=out_spec,
            ),
            compiler_params=pltpu.CompilerParams(
                dimension_semantics=("parallel", "parallel"),
                vmem_limit_bytes=vmem_limit),
            cost_estimate=pl.CostEstimate(
                flops=flops, transcendentals=0,
                bytes_accessed=bytes_accessed),
        )(x, *ws)

    if single_buffer_weights:
        try:
            out = run(True)
        except Exception:
            # Graceful fallback if this JAX build rejects Buffered(1) weights;
            # any unrelated error re-surfaces from the retry.
            out = run(False)
    else:
        out = run(False)

    if HW_pad != HW:
        out = out[:, :, :HW]
    # Free reshape back to NCHW.
    return out.reshape(B, C_out, H, W)


# ---------------------------------------------------------------------------
# Parameter init (matches nn.init.xavier_uniform_ for a (out,in,1,1) conv)
# ---------------------------------------------------------------------------
def _xavier_uniform_conv1x1(key, out_features, in_features):
    fan_in, fan_out = in_features, out_features  # kernel_size = 1
    bound = (6.0 / (fan_in + fan_out)) ** 0.5
    # PyTorch (C_out, C_in) layout with the 1x1 spatial dims squeezed.
    return jax.random.uniform(
        key, (out_features, in_features), jnp.float32, -bound, bound)


def make_mlp_block_params(key, in_features, out_features, depth_of_mlp):
    weights = []
    c_in = in_features
    for _ in range(depth_of_mlp):
        key, sub = jax.random.split(key)
        weights.append(_xavier_uniform_conv1x1(sub, out_features, c_in))
        c_in = out_features
    return weights


if __name__ == "__main__":
    key = jax.random.PRNGKey(0)
    k_x, k_w = jax.random.split(key)

    B, C_in, H, W = 2, 4, 16, 16
    C_out, depth = 32, 3

    x = jax.random.normal(k_x, (B, C_in, H, W), dtype=jnp.float32)
    weights = make_mlp_block_params(k_w, C_in, C_out, depth)

    # Pure-JAX f32 reference (1x1 conv == per-pixel channel matmul, ReLU each).
    ref = x.reshape(B, C_in, H * W)
    for w in weights:
        ref = jnp.maximum(jnp.einsum("oc,bcp->bop", w, ref), 0.0)
    ref = ref.reshape(B, C_out, H, W)

    # Default path: bf16 operands, f32 accumulation, f32 output.
    out_bf16 = jax.block_until_ready(mlp_block_pallas(x, weights))
    assert out_bf16.shape == (B, C_out, H, W)
    assert out_bf16.dtype == jnp.float32
    assert jnp.allclose(out_bf16, ref, atol=5e-2, rtol=5e-2)

    # Exact f32 path (tight tolerance).
    out_f32 = jax.block_until_ready(
        mlp_block_pallas(x, weights, compute_dtype=jnp.float32))
    assert jnp.allclose(out_f32, ref, atol=1e-4, rtol=1e-4)

    print("KERNEL_OK")
</pallas_src>

<mosaic_0001>
module attributes {stable_mosaic.version = 11 : i64} {
  func.func @_mlp_block_kernel(%arg0: i32, %arg1: i32, %arg2: memref<1x4x128xf32, #tpu.memory_space<vmem>>, %arg3: memref<32x4xbf16, #tpu.memory_space<vmem>>, %arg4: memref<32x32xbf16, #tpu.memory_space<vmem>>, %arg5: memref<32x32xbf16, #tpu.memory_space<vmem>>, %arg6: memref<1x32x128xf32, #tpu.memory_space<vmem>>) attributes {dimension_semantics = [#tpu.dimension_semantics<parallel>, #tpu.dimension_semantics<parallel>], iteration_bounds = array<i64: 2, 2>, scalar_prefetch = 0 : i64, scratch_operands = 0 : i64, tpu.core_type = #tpu.core_type<tc>, window_params = [{transform_indices = @transform_0, window_bounds = array<i64: 1, 4, 128>}, {pipeline_mode = #tpu.pipeline_mode<synchronous>, transform_indices = @transform_1, window_bounds = array<i64: 32, 4>}, {pipeline_mode = #tpu.pipeline_mode<synchronous>, transform_indices = @transform_2, window_bounds = array<i64: 32, 32>}, {pipeline_mode = #tpu.pipeline_mode<synchronous>, transform_indices = @transform_3, window_bounds = array<i64: 32, 32>}, {transform_indices = @transform_4, window_bounds = array<i64: 1, 32, 128>}]} {
    %c0 = arith.constant 0 : index
    %c0_0 = arith.constant 0 : index
    %c0_1 = arith.constant 0 : index
    %0 = vector.load %arg2[%c0, %c0_0, %c0_1] : memref<1x4x128xf32, #tpu.memory_space<vmem>>, vector<1x4x128xf32>
    %1 = vector.shape_cast %0 : vector<1x4x128xf32> to vector<4x128xf32>
    %c0_2 = arith.constant 0 : index
    %c0_3 = arith.constant 0 : index
    %2 = vector.load %arg3[%c0_2, %c0_3] : memref<32x4xbf16, #tpu.memory_space<vmem>>, vector<32x4xbf16>
    %3 = arith.truncf %1 : vector<4x128xf32> to vector<4x128xbf16>
    %cst = arith.constant dense<0.000000e+00> : vector<32x128xf32>
    %4 = tpu.matmul %2, %3, %cst {dimension_numbers = #tpu.dot_dimension_numbers<[1], [0], [0], [1], [0, 0, 1, 1], [], []>} : vector<32x4xbf16>, vector<4x128xbf16>, vector<32x128xf32> -> vector<32x128xf32>
    %cst_4 = arith.constant 0.000000e+00 : f32
    %5 = vector.broadcast %cst_4 : f32 to vector<32x128xf32>
    %6 = arith.maximumf %4, %5 : vector<32x128xf32>
    %c0_5 = arith.constant 0 : index
    %c0_6 = arith.constant 0 : index
    %7 = vector.load %arg4[%c0_5, %c0_6] : memref<32x32xbf16, #tpu.memory_space<vmem>>, vector<32x32xbf16>
    %8 = arith.truncf %6 : vector<32x128xf32> to vector<32x128xbf16>
    %cst_7 = arith.constant dense<0.000000e+00> : vector<32x128xf32>
    %9 = tpu.matmul %7, %8, %cst_7 {dimension_numbers = #tpu.dot_dimension_numbers<[1], [0], [0], [1], [0, 0, 1, 1], [], []>} : vector<32x32xbf16>, vector<32x128xbf16>, vector<32x128xf32> -> vector<32x128xf32>
    %cst_8 = arith.constant 0.000000e+00 : f32
    %10 = vector.broadcast %cst_8 : f32 to vector<32x128xf32>
    %11 = arith.maximumf %9, %10 : vector<32x128xf32>
    %c0_9 = arith.constant 0 : index
    %c0_10 = arith.constant 0 : index
    %12 = vector.load %arg5[%c0_9, %c0_10] : memref<32x32xbf16, #tpu.memory_space<vmem>>, vector<32x32xbf16>
    %13 = arith.truncf %11 : vector<32x128xf32> to vector<32x128xbf16>
    %cst_11 = arith.constant dense<0.000000e+00> : vector<32x128xf32>
    %14 = tpu.matmul %12, %13, %cst_11 {dimension_numbers = #tpu.dot_dimension_numbers<[1], [0], [0], [1], [0, 0, 1, 1], [], []>} : vector<32x32xbf16>, vector<32x128xbf16>, vector<32x128xf32> -> vector<32x128xf32>
    %cst_12 = arith.constant 0.000000e+00 : f32
    %15 = vector.broadcast %cst_12 : f32 to vector<32x128xf32>
    %16 = arith.maximumf %14, %15 : vector<32x128xf32>
    %c0_13 = arith.constant 0 : index
    %c0_14 = arith.constant 0 : index
    %c0_15 = arith.constant 0 : index
    %17 = vector.load %arg6[%c0_13, %c0_14, %c0_15] : memref<1x32x128xf32, #tpu.memory_space<vmem>>, vector<1x32x128xf32>
    %18 = vector.shape_cast %17 : vector<1x32x128xf32> to vector<32x128xf32>
    %19 = vector.shape_cast %16 : vector<32x128xf32> to vector<1x32x128xf32>
    tpu.vector_store %arg6[%c0_13, %c0_14, %c0_15], %19 {strides = array<i32>} : memref<1x32x128xf32, #tpu.memory_space<vmem>>, vector<1x32x128xf32>,
    return
  }
  func.func @transform_0(%arg0: i32, %arg1: i32) -> (i32, i32, i32) {
    %c0_i32 = arith.constant 0 : i32
    %c0_i32_0 = arith.constant 0 : i32
    return %arg0, %c0_i32, %arg1 : i32, i32, i32
  }
  func.func @transform_1(%arg0: i32, %arg1: i32) -> (i32, i32) {
    %c0_i32 = arith.constant 0 : i32
    %c0_i32_0 = arith.constant 0 : i32
    %c0_i32_1 = arith.constant 0 : i32
    return %c0_i32, %c0_i32_0 : i32, i32
  }
  func.func @transform_2(%arg0: i32, %arg1: i32) -> (i32, i32) {
    %c0_i32 = arith.constant 0 : i32
    %c0_i32_0 = arith.constant 0 : i32
    %c0_i32_1 = arith.constant 0 : i32
    return %c0_i32, %c0_i32_0 : i32, i32
  }
  func.func @transform_3(%arg0: i32, %arg1: i32) -> (i32, i32) {
    %c0_i32 = arith.constant 0 : i32
    %c0_i32_0 = arith.constant 0 : i32
    %c0_i32_1 = arith.constant 0 : i32
    return %c0_i32, %c0_i32_0 : i32, i32
  }
  func.func @transform_4(%arg0: i32, %arg1: i32) -> (i32, i32, i32) {
    %c0_i32 = arith.constant 0 : i32
    %c0_i32_0 = arith.constant 0 : i32
    return %arg0, %c0_i32, %arg1 : i32, i32, i32
  }
}

module attributes {stable_mosaic.version = 11 : i64} {
  func.func @_mlp_block_kernel(%arg0: i32, %arg1: i32, %arg2: memref<1x4x128xf32, #tpu.memory_space<vmem>>, %arg3: memref<32x4xbf16, #tpu.memory_space<vmem>>, %arg4: memref<32x32xbf16, #tpu.memory_space<vmem>>, %arg5: memref<32x32xbf16, #tpu.memory_space<vmem>>, %arg6: memref<1x32x128xf32, #tpu.memory_space<vmem>>) attributes {dimension_semantics = [#tpu.dimension_semantics<parallel>, #tpu.dimension_semantics<parallel>], iteration_bounds = array<i64: 2, 2>, scalar_prefetch = 0 : i64, scratch_operands = 0 : i64, tpu.core_type = #tpu.core_type<tc>, window_params = [{transform_indices = @transform_0, window_bounds = array<i64: 1, 4, 128>}, {pipeline_mode = #tpu.pipeline_mode<synchronous>, transform_indices = @transform_1, window_bounds = array<i64: 32, 4>}, {pipeline_mode = #tpu.pipeline_mode<synchronous>, transform_indices = @transform_2, window_bounds = array<i64: 32, 32>}, {pipeline_mode = #tpu.pipeline_mode<synchronous>, transform_indices = @transform_3, window_bounds = array<i64: 32, 32>}, {transform_indices = @transform_4, window_bounds = array<i64: 1, 32, 128>}]} {
    %c0 = arith.constant 0 : index
    %c0_0 = arith.constant 0 : index
    %c0_1 = arith.constant 0 : index
    %0 = vector.load %arg2[%c0, %c0_0, %c0_1] : memref<1x4x128xf32, #tpu.memory_space<vmem>>, vector<1x4x128xf32>
    %1 = vector.shape_cast %0 : vector<1x4x128xf32> to vector<4x128xf32>
    %c0_2 = arith.constant 0 : index
    %c0_3 = arith.constant 0 : index
    %2 = vector.load %arg3[%c0_2, %c0_3] : memref<32x4xbf16, #tpu.memory_space<vmem>>, vector<32x4xbf16>
    %3 = arith.truncf %1 : vector<4x128xf32> to vector<4x128xbf16>
    %cst = arith.constant dense<0.000000e+00> : vector<32x128xf32>
    %4 = tpu.matmul %2, %3, %cst {dimension_numbers = #tpu.dot_dimension_numbers<[1], [0], [0], [1], [0, 0, 1, 1], [], []>} : vector<32x4xbf16>, vector<4x128xbf16>, vector<32x128xf32> -> vector<32x128xf32>
    %cst_4 = arith.constant 0.000000e+00 : f32
    %5 = vector.broadcast %cst_4 : f32 to vector<32x128xf32>
    %6 = arith.maximumf %4, %5 : vector<32x128xf32>
    %c0_5 = arith.constant 0 : index
    %c0_6 = arith.constant 0 : index
    %7 = vector.load %arg4[%c0_5, %c0_6] : memref<32x32xbf16, #tpu.memory_space<vmem>>, vector<32x32xbf16>
    %8 = arith.truncf %6 : vector<32x128xf32> to vector<32x128xbf16>
    %cst_7 = arith.constant dense<0.000000e+00> : vector<32x128xf32>
    %9 = tpu.matmul %7, %8, %cst_7 {dimension_numbers = #tpu.dot_dimension_numbers<[1], [0], [0], [1], [0, 0, 1, 1], [], []>} : vector<32x32xbf16>, vector<32x128xbf16>, vector<32x128xf32> -> vector<32x128xf32>
    %cst_8 = arith.constant 0.000000e+00 : f32
    %10 = vector.broadcast %cst_8 : f32 to vector<32x128xf32>
    %11 = arith.maximumf %9, %10 : vector<32x128xf32>
    %c0_9 = arith.constant 0 : index
    %c0_10 = arith.constant 0 : index
    %12 = vector.load %arg5[%c0_9, %c0_10] : memref<32x32xbf16, #tpu.memory_space<vmem>>, vector<32x32xbf16>
    %13 = arith.truncf %11 : vector<32x128xf32> to vector<32x128xbf16>
    %cst_11 = arith.constant dense<0.000000e+00> : vector<32x128xf32>
    %14 = tpu.matmul %12, %13, %cst_11 {dimension_numbers = #tpu.dot_dimension_numbers<[1], [0], [0], [1], [0, 0, 1, 1], [], []>} : vector<32x32xbf16>, vector<32x128xbf16>, vector<32x128xf32> -> vector<32x128xf32>
    %cst_12 = arith.constant 0.000000e+00 : f32
    %15 = vector.broadcast %cst_12 : f32 to vector<32x128xf32>
    %16 = arith.maximumf %14, %15 : vector<32x128xf32>
    %c0_13 = arith.constant 0 : index
    %c0_14 = arith.constant 0 : index
    %c0_15 = arith.constant 0 : index
    %17 = vector.load %arg6[%c0_13, %c0_14, %c0_15] : memref<1x32x128xf32, #tpu.memory_space<vmem>>, vector<1x32x128xf32>
    %18 = vector.shape_cast %17 : vector<1x32x128xf32> to vector<32x128xf32>
    %19 = vector.shape_cast %16 : vector<32x128xf32> to vector<1x32x128xf32>
    tpu.vector_store %arg6[%c0_13, %c0_14, %c0_15], %19 {strides = array<i32>} : memref<1x32x128xf32, #tpu.memory_space<vmem>>, vector<1x32x128xf32>,
    return
  }
  func.func @transform_0(%arg0: i32, %arg1: i32) -> (i32, i32, i32) {
    %c0_i32 = arith.constant 0 : i32
    %c0_i32_0 = arith.constant 0 : i32
    return %arg0, %c0_i32, %arg1 : i32, i32, i32
  }
  func.func @transform_1(%arg0: i32, %arg1: i32) -> (i32, i32) {
    %c0_i32 = arith.constant 0 : i32
    %c0_i32_0 = arith.constant 0 : i32
    %c0_i32_1 = arith.constant 0 : i32
    return %c0_i32, %c0_i32_0 : i32, i32
  }
  func.func @transform_2(%arg0: i32, %arg1: i32) -> (i32, i32) {
    %c0_i32 = arith.constant 0 : i32
    %c0_i32_0 = arith.constant 0 : i32
    %c0_i32_1 = arith.constant 0 : i32
    return %c0_i32, %c0_i32_0 : i32, i32
  }
  func.func @transform_3(%arg0: i32, %arg1: i32) -> (i32, i32) {
    %c0_i32 = arith.constant 0 : i32
    %c0_i32_0 = arith.constant 0 : i32
    %c0_i32_1 = arith.constant 0 : i32
    return %c0_i32, %c0_i32_0 : i32, i32
  }
  func.func @transform_4(%arg0: i32, %arg1: i32) -> (i32, i32, i32) {
    %c0_i32 = arith.constant 0 : i32
    %c0_i32_0 = arith.constant 0 : i32
    return %arg0, %c0_i32, %arg1 : i32, i32, i32
  }
}

</mosaic_0001>

<bundles_post_ra>
// kernel: tpu_custom_call.1
= control target key start
LH: loop header
LB: loop body
LE: loop exit
PB: predicated region body
PF: predicated region fallthrough
CT: control target
= control target key end

     0   :  { %9 = vsyncpa [#allocation3], 0  ;;  %s1182_s0 = inlined_call_operand.vmem [shape: f32[2,4,256], index: 0, kind: input, shape index: {}]   ;;  %s1183_s1 = inlined_call_operand.vmem [shape: bf16[32,4], index: 1, kind: input, shape index: {}]   ;;  %s1184_s2 = inlined_call_operand.hbm [shape: bf16[32,32], index: 2, kind: input, shape index: {}]   ;;  %s1185_s3 = inlined_call_operand.hbm [shape: bf16[32,32], index: 3, kind: input, shape index: {}]   ;;  %s1186_s4 = inlined_call_operand.hbm [shape: f32[2,32,256], index: 4, kind: output, shape index: {}]  }
   0x1   :  { %10 = vsyncpa [#allocation6], 0 }
   0x2   :  { %11 = vsyncpa [#allocation4], 0 }
   0x3   :  { %13 = vsyncpa [#allocation4 + $0x1], 0  ;;  %s964_s15 = smov 0   ;;  %s966_s16 = smov 0  }
   0x4   :  { %s968_s17 = smov 0   ;;  %s970_s18 = smov 0  }
   0x5   :  { %s972_s19 = smov 0   ;;  %s974_s20 = smov 0  }
   0x6   :  { %s976_s21 = smov 0   ;;  %s978_s22 = smov 0  }
   0x7 LB: > { %1195 = sst [smem:[#allocation11_spill]] %s921_s20  ;;  %s605_s23 = sadd.s32 4294967295, %s929_s22   ;;  %s929_s22 = sphi %s978_s22, %s19_s22   ;;  %s925_s21 = sphi %s976_s21, %s1211_s21   ;;  %s921_s20 = sphi %s974_s20, %s1210_s20   ;;  %s917_s19 = sphi %s972_s19, %s1209_s19   ;;  %s913_s18 = sphi %s970_s18, %s1208_s18   ;;  %s909_s17 = sphi %s968_s17, %s1214_s17   ;;  %s905_s16 = sphi %s966_s16, %s1213_s16   ;;  %s901_s15 = sphi %s964_s15, %s1212_s15  }
   0x8   : > { %1196 = sst [smem:[#allocation12_spill]] %s925_s21  ;;  %s606_s24 = sadd.s32 4294967294, %s929_s22  }
   0x9   : > { %s28_s25 = sadd.s32 1, %s921_s20  ;;  %s31_s26 = sadd.s32 1, %s925_s21 }
   0xa   : > { %p29_p0 = scmp.ge.s32.totalorder %s28_s25, 2  ;;  %s131_s27 = sadd.s32 1, %s909_s17 }
   0xb   : > { %p141_p1 = scmp.ne.s32.totalorder %s909_s17, %s905_s16  ;;  %p142_p2 = scmp.eq.s32.totalorder %s605_s23, 3 }
   0xc   : > { %s1216_s25 = smov (%p29_p0, %s28_s25), 0  ;;  %s1218_s26 = smov (!%p29_p0, %s31_s26), %s925_s21 }
   0xd   : > { %1197 = sst [smem:[#allocation13_spill]] %s1216_s25  ;;  %s127_s28 = ssub.s32 %s921_s20, %s1216_s25 }
   0xe   : > { %p1016_p3 = por %p142_p2, %p141_p1  ;;  %p33_p4 = scmp.ge.s32.totalorder %s1218_s26, 2 }
   0xf   : > { %p147_p5 = scmp.ne.s32.totalorder %s905_s16, %s901_s15  ;;  %p148_p6 = scmp.eq.s32.totalorder %s606_s24, 3 }
  0x10   : > { %s1198_s29 = scalar_select %p1016_p3, 1, 0 }
  0x11   : > { %p607_p7 = scmp.ge.s32.totalorder %s929_s22, 1  ;;  %s1220_s26 = smov (%p33_p4, %s1218_s26), 0 }
  0x12   : > { %1199 = sst [smem:[#allocation14_spill]] %s1220_s26  ;;  %p1025_p8 = por %p148_p6, %p147_p5 }
  0x13   : > { %p155_p9 = scmp.lt.s32.totalorder %s929_s22, 5  ;;  %s126_s5 = ssub.s32 %s925_s21, %s1220_s26 }
  0x14   : > { %s1200_s30 = scalar_select %p1025_p8, 1, 0 }
  0x15   : > { %s128_s6 = sor.u32 %s127_s28, %s126_s5  ;;  %p1032_p10 = pnand %p607_p7, %p155_p9 }
  0x16   : > { %p129_p11 = scmp.eq.s32.totalorder %s128_s6, 0  ;;  %p1036_p12 = scmp.eq.s32.totalorder %s605_s23, 0 }
  0x17   : > { %s1201_s7 = scalar_select %p1032_p10, 1, 0 }
  0x18   : > { %s1202_s8 = scalar_select %p1036_p12, 1, 0 }
  0x19   : > { %p678_p13 = pneg %p1032_p10  ;;  %s931_s10 = smov [#allocation2]  }
  0x1a   : > { %s1043_s9 = scalar_select %p129_p11, %s909_s17, %s131_s27  }
  0x1b   : > { %s170_s11 = sshll.u32 %s931_s10, 4  ;;  %p1047_p0 = pnand %p1036_p12, %p678_p13  ;;  %s171_s11 = int_to_ptr.vmem [resolvable:$true] %s170_s11 }
  0x1c   : > { %s771_s23 = scalar_lea.hbm %s1184_s2, 256 }
  0x1d   : > { %p772_p1 = scmp.ne.s32.totalorder %s1184_s2, %s771_s23  ;;  %p773_p2 = pneg %p1047_p0 }
  0x1e   : > { %p778_p6 = scmp.lt.u32.totalorder %s771_s23, %s1184_s2 }
  0x1f   : > { %p774_p4 = pnand %p773_p2, %p772_p1 }
  0x21   : > { %p775_p5 = pneg %p774_p4 }
  0x23   : > { %p780_p7 = pnand %p778_p6, %p775_p5 }
  0x25   : > { %783 = shalt.err (!%p780_p7)
}
  0x26   : > { %s784_s6 = scalar_lea.vmem %s171_s11, 256  ;;  %p792_p8 = scmp.lt.s32.totalorder %s171_s11, %s171_s11 }
  0x27   : > { %p785_p9 = scmp.ne.s32.totalorder %s171_s11, %s784_s6  ;;  %p793_p3 = scmp.lt.s32.totalorder %s784_s6, %s784_s6 }
  0x29   : > { %p787_p11 = pnand %p785_p9, %p773_p2  ;;  %p794_p12 = por %p793_p3, %p792_p8 }
  0x2b   : > { %p788_p13 = pneg %p787_p11 }
  0x2d   : > { %p795_p10 = pnand %p794_p12, %p788_p13 }
  0x2f   : > { %798 = shalt.err (!%p795_p10)
}
  0x30   : > { %s932_s10 = smov 64   ;;  %s933_s13 = smov 4  }
  0x31   : > { %681 = dma.hbm_to_vmem [thread:$0]  (!%p1047_p0), %s1184_s2, 256, %s171_s11, [#allocation3], %s932_s10, %s932_s10, %s933_s13  }
  0x32   : > { %s934_s24 = smov [#allocation5]   ;;  %s799_s26 = scalar_lea.hbm %s1185_s3, 256 }
  0x33   : > { %s183_s28 = sshll.u32 %s934_s24, 4  ;;  %p800_p3 = scmp.ne.s32.totalorder %s1185_s3, %s799_s26  ;;  %s184_s28 = int_to_ptr.vmem [resolvable:$true] %s183_s28 }
  0x34   : > { %p806_p12 = scmp.lt.u32.totalorder %s799_s26, %s1185_s3 }
  0x35   : > { %p802_p8 = pnand %p800_p3, %p773_p2 }
  0x37   : > { %p803_p10 = pneg %p802_p8 }
  0x39   : > { %p808_p1 = pnand %p806_p12, %p803_p10 }
  0x3b   : > { %811 = shalt.err (!%p808_p1)
}
  0x3c   : > { %s812_s11 = scalar_lea.vmem %s184_s28, 256  ;;  %p820_p7 = scmp.lt.s32.totalorder %s184_s28, %s184_s28 }
  0x3d   : > { %p813_p4 = scmp.ne.s32.totalorder %s184_s28, %s812_s11  ;;  %p821_p9 = scmp.lt.s32.totalorder %s812_s11, %s812_s11 }
  0x3f   : > { %p815_p5 = pnand %p813_p4, %p773_p2  ;;  %p822_p11 = por %p821_p9, %p820_p7 }
  0x41   : > { %p816_p6 = pneg %p815_p5 }
  0x43   : > { %p823_p13 = pnand %p822_p11, %p816_p6 }
  0x45   : > { %826 = shalt.err (!%p823_p13)
}
  0x46   : > { %684 = dma.hbm_to_vmem [thread:$0]  (!%p1047_p0), %s1185_s3, 256, %s184_s28, [#allocation6], %s932_s10, %s932_s10, %s933_s13  }
  0x47   : > { %p1204_p3 = scmp.ne.s32.totalorder %s1201_s7, 0 }
  0x48   : > { %p1205_p8 = scmp.ne.s32.totalorder (!%p1204_p3), %s1202_s8, 0 }
  0x49   : > { %210 = sbr.rel (%p1204_p3) target bundleno = 785 (0x311), region = 36 }
  0x50   : > { %888 = dma.done.wait (%p1205_p8), [#allocation3], 256  }
  0x51   : > { %890 = vsyncadd (%p1205_p8), [#allocation3], 4294967040 }
  0x52   : > { %892 = dma.done.wait (%p1205_p8), [#allocation6], 256  }
  0x53   : > { %894 = vsyncadd (%p1205_p8), [#allocation6], 4294967040  ;;  %p243_p0 = scmp.lt.s32.totalorder %s917_s19, 1  ;;  %p245_p2 = scmp.lt.s32.totalorder %s913_s18, 1  ;;  %vm268_vm0 = vcmask 31744   ;;  %vm275_vm1 = vcmask 1041408  }
  0x54   : > { %v765_v0 = vld [vmem:[%s1183_s1] sm:$0xff]   ;;  %v766_v4 = vld [vmem:[%s1183_s1 + $0x8] sm:$0xff]   ;;  %vm348_vm2 = vcmask 261120   ;;  %v769_v17 = vld [vmem:[#allocation5] sm:$0xff]   ;;  %s240_s5 = sand.u32 1, %s905_s16   ;;  %s630_s6 = sshll.u32 %s917_s19, 3 }
  0x55   : > { %s244_s20 = scalar_select %p243_p0, %s917_s19, 1  ;;  %647 = vmatprep.mubr.msk.bf16.mxu0 %vm268_vm0, %v765_v0  ;;  %v767_v5 = vld [vmem:[#allocation2] sm:$0xff]   ;;  %v768_v16 = vld [vmem:[#allocation2 + $0x8] sm:$0xff]   ;;  %v770_v28 = vld [vmem:[#allocation5 + $0x8] sm:$0xff]  }
  0x56   : > { %s246_s21 = scalar_select %p245_p2, %s913_s18, 1  ;;  %655 = vmatprep.mubr.msk.bf16.mxu1 %vm348_vm2, %v767_v5 }
  0x57   : > { %s615_s26 = sshll.u32 %s244_s20, 1  ;;  %s614_s11 = sshll.u32 %s240_s5, 5 }
  0x58   : > { %s248_s7 = sadd.s32 %s615_s26, %s246_s21  ;;  %s499_s25 = sadd.s32 %s913_s18, %s630_s6 }
  0x59   : > { %s616_s12 = sshll.u32 %s248_s7, 2  ;;  %s242_s14 = scalar_lea.vmem [#allocation7], %s614_s11 }
  0x5a   : > { %s250_s23 = scalar_lea.vmem %s1182_s0, %s616_s12  ;;  %s502_s20 = sshll.u32 %s242_s14, 4  ;;  %s1123_s20 = int_to_ptr.vmem [resolvable:$true] %s502_s20 }
  0x5b   : > { %v252_v1 = vld [vmem:[%s250_s23] sm:$0xf]  ;;  %s631_s21 = sshll.u32 %s499_s25, 7  ;;  %s1130_s7 = scalar_lea.sflag [#allocation4], %s240_s5 }
  0x5c   : > { %v257_v2 = vpack.c.bf16 %v252_v1, %v252_v1  ;;  %s1128_s18 = scalar_lea.hbm %s1186_s4, %s631_s21  ;;  %s827_s12 = scalar_lea.vmem %s1123_s20, 512 }
  0x5d   : > { %p828_p10 = scmp.ne.s32.totalorder %s1123_s20, %s827_s12  ;;  %p1206_p12 = scmp.ne.s32.totalorder %s1198_s29, 0 }
  0x5e   : > { %667 = vmatprep.subr.msk.bf16.mxu0 %vm275_vm1, %v257_v2  ;;  %v277_v3 = vsel %vm275_vm1, %v257_v2, 0  ;;  %s935_s10 = smov [#allocation7]  }
  0x5f   : > { %646 = vmatpush3.bf16.msra.mxu0 %v277_v3  ;;  %p829_p1 = pnand %p828_p10, %p1206_p12  ;;  %s831_s13 = sshll.u32 %s935_s10, 4  ;;  %s832_s13 = int_to_ptr.vmem [resolvable:$false] %s831_s13 }
  0x60   : > { %s833_s23 = scalar_lea.vmem %s832_s13, 1024  ;;  %p834_p5 = scmp.lt.s32.totalorder %s1123_s20, %s832_s13 }
  0x61   : > { %p830_p4 = pneg %p829_p1  ;;  %p835_p6 = scmp.lt.s32.totalorder %s833_s23, %s827_s12 }
  0x62   : > { %648 = vmatmul.mubr.msk.bf16.vlgmr.msra.gmra.mrb[0].mxu0 %vm268_vm0, %v766_v4 }
  0x63   : > { %663 = vmatprep.mubr.msk.bf16.mxu0 %vm348_vm2, %v769_v17  ;;  %p836_p7 = por %p835_p6, %p834_p5 }
  0x65   : > { %p837_p9 = pnand %p836_p7, %p830_p4 }
 0x135   : > { %v649_v6 = vpop.f32.mrb[0].mxu0 }
 0x136   : > { %v313_v7 = vpop.f32.mrb[1].mxu0  ;;  %v330_v9 = vmax.f32 %v649_v6, 0.0 }
 0x137   : > { %v650_v8 = vpop.f32.mrb[2].mxu0  ;;  %v328_v12 = vmax.f32 %v313_v7, 0.0 }
 0x138   : > { %v331_v10 = vmax.f32 %v650_v8, 0.0  ;;  %v316_v11 = vpop.f32.mrb[3].mxu0 }
 0x139   : > { %v329_v13 = vmax.f32 %v316_v11, 0.0 }
 0x13a   : > { %v337_v14 = vpack.c.bf16 %v331_v10, %v330_v9 }
 0x13b   : > { %v336_v15 = vpack.c.bf16 %v329_v13, %v328_v12 }
 0x13d   : > { %651 = vmatprep.subr.bf16.mxu1 %v336_v15 }
 0x13e   : > { %652 = vmatpush3.bf16.msra.mxu1 %v336_v15 }
 0x13f   : > { %653 = vmatprep.subr.bf16.mxu1 %v337_v14 }
 0x142   : > { %654 = vmatpush3.bf16.msra.mxu1 %v337_v14 }
 0x145   : > { %656 = vmatmul.mubr.msk.bf16.vlgmr.msra.gmra.mrb[0].mxu1 %vm348_vm2, %v768_v16 }
 0x218   : > { %v657_v18 = vpop.f32.mrb[0].mxu1 }
 0x219   : > { %v389_v19 = vpop.f32.mrb[1].mxu1  ;;  %v406_v21 = vmax.f32 %v657_v18, 0.0 }
 0x21a   : > { %v658_v20 = vpop.f32.mrb[2].mxu1  ;;  %v404_v24 = vmax.f32 %v389_v19, 0.0 }
 0x21b   : > { %v407_v22 = vmax.f32 %v658_v20, 0.0  ;;  %v392_v23 = vpop.f32.mrb[3].mxu1 }
 0x21c   : > { %v405_v25 = vmax.f32 %v392_v23, 0.0 }
 0x21d   : > { %v413_v26 = vpack.c.bf16 %v407_v22, %v406_v21 }
 0x21e   : > { %v412_v27 = vpack.c.bf16 %v405_v25, %v404_v24 }
 0x220   : > { %659 = vmatprep.subr.bf16.mxu0 %v412_v27 }
 0x221   : > { %660 = vmatpush3.bf16.msra.mxu0 %v412_v27 }
 0x222   : > { %661 = vmatprep.subr.bf16.mxu0 %v413_v26 }
 0x225   : > { %662 = vmatpush3.bf16.msra.mxu0 %v413_v26 }
 0x228   : > { %664 = vmatmul.mubr.msk.bf16.vlgmr.msra.gmra.mrb[4].mxu0 %vm348_vm2, %v770_v28 }
 0x2fb   : > { %v665_v29 = vpop.f32.mrb[4].mxu0 }
 0x2fc   : > { %v481_v30 = vmax.f32 %v665_v29, 0.0  ;;  %v464_v31 = vpop.f32.mrb[5].mxu0 }
 0x2fd   : > { %v479_v32 = vmax.f32 %v464_v31, 0.0  ;;  %v666_v33 = vpop.f32.mrb[6].mxu0 }
 0x2fe   : > { %485 = vst [vmem:[%s242_s14 + $0x10] sm:$0xff] %v481_v30  ;;  %v482_v34 = vmax.f32 %v666_v33, 0.0  ;;  %v467_v35 = vpop.f32.mrb[7].mxu0 }
 0x2ff   : > { %483 = vst [vmem:[%s242_s14] sm:$0xff] %v479_v32  ;;  %v480_v36 = vmax.f32 %v467_v35, 0.0 }
 0x300   : > { %486 = vst [vmem:[%s242_s14 + $0x18] sm:$0xff] %v482_v34 }
 0x301   : > { %484 = vst [vmem:[%s242_s14 + $0x8] sm:$0xff] %v480_v36 }
 0x302   : > { %840 = shalt.err (!%p837_p9)
}
 0x303   : > { %s841_s24 = scalar_lea.hbm %s1128_s18, 512  ;;  %s845_s27 = scalar_lea.hbm %s1186_s4, 2048 }
 0x304   : > { %p842_p11 = scmp.ne.s32.totalorder %s1128_s18, %s841_s24  ;;  %p846_p8 = scmp.lt.u32.totalorder %s1128_s18, %s1186_s4 }
 0x305   : > { %p847_p0 = scmp.lt.u32.totalorder %s845_s27, %s841_s24  ;;  %p849_p10 = scmp.lt.u32.totalorder %s841_s24, %s1128_s18 }
 0x306   : > { %p843_p13 = pnand %p842_p11, %p1206_p12 }
 0x307   : > { %p848_p2 = por %p847_p0, %p846_p8 }
 0x308   : > { %p844_p3 = pneg %p843_p13 }
 0x309   : > { %p850_p1 = por %p849_p10, %p848_p2 }
 0x30b   : > { %p851_p4 = pnand %p850_p1, %p844_p3 }
 0x30d   : > { %854 = shalt.err (!%p851_p4)
}
 0x30e   : > { %s936_s11 = smov 128   ;;  %s937_s25 = smov 256  }
 0x30f   : > { %s938_s14 = smov 8  }
 0x310   : > { %676 = dma.vmem_to_hbm [thread:$0]  (%p1206_p12), %s1123_s20, 512, %s1128_s18, %s1130_s7, %s936_s11, %s937_s25, %s938_s14  }
 0x311 PF: > { %p693_p5 = scmp.ge.s32.totalorder %s929_s22, 2  ;;  %s517_s21 = sand.u32 1, %s901_s15  }
 0x312   : > { %p1207_p6 = scmp.ne.s32.totalorder %s1200_s30, 0  ;;  %s518_s19 = scalar_lea.sflag [#allocation4], %s517_s21 }
 0x314   : > { %p686_p7 = pnand %p693_p5, %p1207_p6 }
 0x316   : > { %896 = dma.done.wait (!%p686_p7), %s518_s19, 512  }
 0x317   : > { %898 = vsyncadd (!%p686_p7), %s518_s19, 4294966784  ;;  %s19_s22 = sadd.s32 1, %s929_s22   ;;  %s1208_s18 = sld [smem:[#allocation11_spill]] }
 0x318   : > { %p16_p9 = scmp.ge.s32.totalorder %s19_s22, 6   ;;  %s1209_s19 = sld [smem:[#allocation12_spill]] }
 0x319   : > { %s1210_s20 = sld [smem:[#allocation13_spill]]  ;;  %s1211_s21 = sld [smem:[#allocation14_spill]] }
 0x31a   : > { %s1212_s15 = smov %s905_s16  ;;  %s1213_s16 = smov %s909_s17 }
 0x31b   : > { %s1214_s17 = smov %s1043_s9  ;;  %18 = sbr.rel (!%p16_p9) target bundleno = 7 (0x7), region = 80 }
 0x322   :  { %523 = vsyncpa [#allocation3], 1 }
 0x323   :  { %525 = vsyncpa [#allocation3 + $0x1], 1 }
 0x324   :  { %526 = vsyncpa [#allocation6], 1 }
 0x325   :  { %527 = vsyncpa [#allocation4], 1 }
 0x326   :  { %529 = vsyncpa [#allocation4 + $0x1], 1 }

// kernel: tpu_custom_call.1
= control target key start
LH: loop header
LB: loop body
LE: loop exit
PB: predicated region body
PF: predicated region fallthrough
CT: control target
= control target key end

     0   :  { %9 = vsyncpa [#allocation3], 0  ;;  %s1182_s0 = inlined_call_operand.vmem [shape: f32[2,4,256], index: 0, kind: input, shape index: {}]   ;;  %s1183_s1 = inlined_call_operand.vmem [shape: bf16[32,4], index: 1, kind: input, shape index: {}]   ;;  %s1184_s2 = inlined_call_operand.hbm [shape: bf16[32,32], index: 2, kind: input, shape index: {}]   ;;  %s1185_s3 = inlined_call_operand.hbm [shape: bf16[32,32], index: 3, kind: input, shape index: {}]   ;;  %s1186_s4 = inlined_call_operand.hbm [shape: f32[2,32,256], index: 4, kind: output, shape index: {}]  }
   0x1   :  { %10 = vsyncpa [#allocation6], 0 }
   0x2   :  { %11 = vsyncpa [#allocation4], 0 }
   0x3   :  { %13 = vsyncpa [#allocation4 + $0x1], 0  ;;  %s964_s15 = smov 0   ;;  %s966_s16 = smov 0  }
   0x4   :  { %s968_s17 = smov 0   ;;  %s970_s18 = smov 0  }
   0x5   :  { %s972_s19 = smov 0   ;;  %s974_s20 = smov 0  }
   0x6   :  { %s976_s21 = smov 0   ;;  %s978_s22 = smov 0  }
   0x7 LB: > { %1195 = sst [smem:[#allocation11_spill]] %s921_s20  ;;  %s605_s23 = sadd.s32 4294967295, %s929_s22   ;;  %s929_s22 = sphi %s978_s22, %s19_s22   ;;  %s925_s21 = sphi %s976_s21, %s1211_s21   ;;  %s921_s20 = sphi %s974_s20, %s1210_s20   ;;  %s917_s19 = sphi %s972_s19, %s1209_s19   ;;  %s913_s18 = sphi %s970_s18, %s1208_s18   ;;  %s909_s17 = sphi %s968_s17, %s1214_s17   ;;  %s905_s16 = sphi %s966_s16, %s1213_s16   ;;  %s901_s15 = sphi %s964_s15, %s1212_s15  }
   0x8   : > { %1196 = sst [smem:[#allocation12_spill]] %s925_s21  ;;  %s606_s24 = sadd.s32 4294967294, %s929_s22  }
   0x9   : > { %s28_s25 = sadd.s32 1, %s921_s20  ;;  %s31_s26 = sadd.s32 1, %s925_s21 }
   0xa   : > { %p29_p0 = scmp.ge.s32.totalorder %s28_s25, 2  ;;  %s131_s27 = sadd.s32 1, %s909_s17 }
   0xb   : > { %p141_p1 = scmp.ne.s32.totalorder %s909_s17, %s905_s16  ;;  %p142_p2 = scmp.eq.s32.totalorder %s605_s23, 3 }
   0xc   : > { %s1216_s25 = smov (%p29_p0, %s28_s25), 0  ;;  %s1218_s26 = smov (!%p29_p0, %s31_s26), %s925_s21 }
   0xd   : > { %1197 = sst [smem:[#allocation13_spill]] %s1216_s25  ;;  %s127_s28 = ssub.s32 %s921_s20, %s1216_s25 }
   0xe   : > { %p1016_p3 = por %p142_p2, %p141_p1  ;;  %p33_p4 = scmp.ge.s32.totalorder %s1218_s26, 2 }
   0xf   : > { %p147_p5 = scmp.ne.s32.totalorder %s905_s16, %s901_s15  ;;  %p148_p6 = scmp.eq.s32.totalorder %s606_s24, 3 }
  0x10   : > { %s1198_s29 = scalar_select %p1016_p3, 1, 0 }
  0x11   : > { %p607_p7 = scmp.ge.s32.totalorder %s929_s22, 1  ;;  %s1220_s26 = smov (%p33_p4, %s1218_s26), 0 }
  0x12   : > { %1199 = sst [smem:[#allocation14_spill]] %s1220_s26  ;;  %p1025_p8 = por %p148_p6, %p147_p5 }
  0x13   : > { %p155_p9 = scmp.lt.s32.totalorder %s929_s22, 5  ;;  %s126_s5 = ssub.s32 %s925_s21, %s1220_s26 }
  0x14   : > { %s1200_s30 = scalar_select %p1025_p8, 1, 0 }
  0x15   : > { %s128_s6 = sor.u32 %s127_s28, %s126_s5  ;;  %p1032_p10 = pnand %p607_p7, %p155_p9 }
  0x16   : > { %p129_p11 = scmp.eq.s32.totalorder %s128_s6, 0  ;;  %p1036_p12 = scmp.eq.s32.totalorder %s605_s23, 0 }
  0x17   : > { %s1201_s7 = scalar_select %p1032_p10, 1, 0 }
  0x18   : > { %s1202_s8 = scalar_select %p1036_p12, 1, 0 }
  0x19   : > { %p678_p13 = pneg %p1032_p10  ;;  %s931_s10 = smov [#allocation2]  }
  0x1a   : > { %s1043_s9 = scalar_select %p129_p11, %s909_s17, %s131_s27  }
  0x1b   : > { %s170_s11 = sshll.u32 %s931_s10, 4  ;;  %p1047_p0 = pnand %p1036_p12, %p678_p13  ;;  %s171_s11 = int_to_ptr.vmem [resolvable:$true] %s170_s11 }
  0x1c   : > { %s771_s23 = scalar_lea.hbm %s1184_s2, 256 }
  0x1d   : > { %p772_p1 = scmp.ne.s32.totalorder %s1184_s2, %s771_s23  ;;  %p773_p2 = pneg %p1047_p0 }
  0x1e   : > { %p778_p6 = scmp.lt.u32.totalorder %s771_s23, %s1184_s2 }
  0x1f   : > { %p774_p4 = pnand %p773_p2, %p772_p1 }
  0x21   : > { %p775_p5 = pneg %p774_p4 }
  0x23   : > { %p780_p7 = pnand %p778_p6, %p775_p5 }
  0x25   : > { %783 = shalt.err (!%p780_p7)
}
  0x26   : > { %s784_s6 = scalar_lea.vmem %s171_s11, 256  ;;  %p792_p8 = scmp.lt.s32.totalorder %s171_s11, %s171_s11 }
  0x27   : > { %p785_p9 = scmp.ne.s32.totalorder %s171_s11, %s784_s6  ;;  %p793_p3 = scmp.lt.s32.totalorder %s784_s6, %s784_s6 }
  0x29   : > { %p787_p11 = pnand %p785_p9, %p773_p2  ;;  %p794_p12 = por %p793_p3, %p792_p8 }
  0x2b   : > { %p788_p13 = pneg %p787_p11 }
  0x2d   : > { %p795_p10 = pnand %p794_p12, %p788_p13 }
  0x2f   : > { %798 = shalt.err (!%p795_p10)
}
  0x30   : > { %s932_s10 = smov 64   ;;  %s933_s13 = smov 4  }
  0x31   : > { %681 = dma.hbm_to_vmem [thread:$0]  (!%p1047_p0), %s1184_s2, 256, %s171_s11, [#allocation3], %s932_s10, %s932_s10, %s933_s13  }
  0x32   : > { %s934_s24 = smov [#allocation5]   ;;  %s799_s26 = scalar_lea.hbm %s1185_s3, 256 }
  0x33   : > { %s183_s28 = sshll.u32 %s934_s24, 4  ;;  %p800_p3 = scmp.ne.s32.totalorder %s1185_s3, %s799_s26  ;;  %s184_s28 = int_to_ptr.vmem [resolvable:$true] %s183_s28 }
  0x34   : > { %p806_p12 = scmp.lt.u32.totalorder %s799_s26, %s1185_s3 }
  0x35   : > { %p802_p8 = pnand %p800_p3, %p773_p2 }
  0x37   : > { %p803_p10 = pneg %p802_p8 }
  0x39   : > { %p808_p1 = pnand %p806_p12, %p803_p10 }
  0x3b   : > { %811 = shalt.err (!%p808_p1)
}
  0x3c   : > { %s812_s11 = scalar_lea.vmem %s184_s28, 256  ;;  %p820_p7 = scmp.lt.s32.totalorder %s184_s28, %s184_s28 }
  0x3d   : > { %p813_p4 = scmp.ne.s32.totalorder %s184_s28, %s812_s11  ;;  %p821_p9 = scmp.lt.s32.totalorder %s812_s11, %s812_s11 }
  0x3f   : > { %p815_p5 = pnand %p813_p4, %p773_p2  ;;  %p822_p11 = por %p821_p9, %p820_p7 }
  0x41   : > { %p816_p6 = pneg %p815_p5 }
  0x43   : > { %p823_p13 = pnand %p822_p11, %p816_p6 }
  0x45   : > { %826 = shalt.err (!%p823_p13)
}
  0x46   : > { %684 = dma.hbm_to_vmem [thread:$0]  (!%p1047_p0), %s1185_s3, 256, %s184_s28, [#allocation6], %s932_s10, %s932_s10, %s933_s13  }
  0x47   : > { %p1204_p3 = scmp.ne.s32.totalorder %s1201_s7, 0 }
  0x48   : > { %p1205_p8 = scmp.ne.s32.totalorder (!%p1204_p3), %s1202_s8, 0 }
  0x49   : > { %210 = sbr.rel (%p1204_p3) target bundleno = 785 (0x311), region = 36 }
  0x50   : > { %888 = dma.done.wait (%p1205_p8), [#allocation3], 256  }
  0x51   : > { %890 = vsyncadd (%p1205_p8), [#allocation3], 4294967040 }
  0x52   : > { %892 = dma.done.wait (%p1205_p8), [#allocation6], 256  }
  0x53   : > { %894 = vsyncadd (%p1205_p8), [#allocation6], 4294967040  ;;  %p243_p0 = scmp.lt.s32.totalorder %s917_s19, 1  ;;  %p245_p2 = scmp.lt.s32.totalorder %s913_s18, 1  ;;  %vm268_vm0 = vcmask 31744   ;;  %vm275_vm1 = vcmask 1041408  }
  0x54   : > { %v765_v0 = vld [vmem:[%s1183_s1] sm:$0xff]   ;;  %v766_v4 = vld [vmem:[%s1183_s1 + $0x8] sm:$0xff]   ;;  %vm348_vm2 = vcmask 261120   ;;  %v769_v17 = vld [vmem:[#allocation5] sm:$0xff]   ;;  %s240_s5 = sand.u32 1, %s905_s16   ;;  %s630_s6 = sshll.u32 %s917_s19, 3 }
  0x55   : > { %s244_s20 = scalar_select %p243_p0, %s917_s19, 1  ;;  %647 = vmatprep.mubr.msk.bf16.mxu0 %vm268_vm0, %v765_v0  ;;  %v767_v5 = vld [vmem:[#allocation2] sm:$0xff]   ;;  %v768_v16 = vld [vmem:[#allocation2 + $0x8] sm:$0xff]   ;;  %v770_v28 = vld [vmem:[#allocation5 + $0x8] sm:$0xff]  }
  0x56   : > { %s246_s21 = scalar_select %p245_p2, %s913_s18, 1  ;;  %655 = vmatprep.mubr.msk.bf16.mxu1 %vm348_vm2, %v767_v5 }
  0x57   : > { %s615_s26 = sshll.u32 %s244_s20, 1  ;;  %s614_s11 = sshll.u32 %s240_s5, 5 }
  0x58   : > { %s248_s7 = sadd.s32 %s615_s26, %s246_s21  ;;  %s499_s25 = sadd.s32 %s913_s18, %s630_s6 }
  0x59   : > { %s616_s12 = sshll.u32 %s248_s7, 2  ;;  %s242_s14 = scalar_lea.vmem [#allocation7], %s614_s11 }
  0x5a   : > { %s250_s23 = scalar_lea.vmem %s1182_s0, %s616_s12  ;;  %s502_s20 = sshll.u32 %s242_s14, 4  ;;  %s1123_s20 = int_to_ptr.vmem [resolvable:$true] %s502_s20 }
  0x5b   : > { %v252_v1 = vld [vmem:[%s250_s23] sm:$0xf]  ;;  %s631_s21 = sshll.u32 %s499_s25, 7  ;;  %s1130_s7 = scalar_lea.sflag [#allocation4], %s240_s5 }
  0x5c   : > { %v257_v2 = vpack.c.bf16 %v252_v1, %v252_v1  ;;  %s1128_s18 = scalar_lea.hbm %s1186_s4, %s631_s21  ;;  %s827_s12 = scalar_lea.vmem %s1123_s20, 512 }
  0x5d   : > { %p828_p10 = scmp.ne.s32.totalorder %s1123_s20, %s827_s12  ;;  %p1206_p12 = scmp.ne.s32.totalorder %s1198_s29, 0 }
  0x5e   : > { %667 = vmatprep.subr.msk.bf16.mxu0 %vm275_vm1, %v257_v2  ;;  %v277_v3 = vsel %vm275_vm1, %v257_v2, 0  ;;  %s935_s10 = smov [#allocation7]  }
  0x5f   : > { %646 = vmatpush3.bf16.msra.mxu0 %v277_v3  ;;  %p829_p1 = pnand %p828_p10, %p1206_p12  ;;  %s831_s13 = sshll.u32 %s935_s10, 4  ;;  %s832_s13 = int_to_ptr.vmem [resolvable:$false] %s831_s13 }
  0x60   : > { %s833_s23 = scalar_lea.vmem %s832_s13, 1024  ;;  %p834_p5 = scmp.lt.s32.totalorder %s1123_s20, %s832_s13 }
  0x61   : > { %p830_p4 = pneg %p829_p1  ;;  %p835_p6 = scmp.lt.s32.totalorder %s833_s23, %s827_s12 }
  0x62   : > { %648 = vmatmul.mubr.msk.bf16.vlgmr.msra.gmra.mrb[0].mxu0 %vm268_vm0, %v766_v4 }
  0x63   : > { %663 = vmatprep.mubr.msk.bf16.mxu0 %vm348_vm2, %v769_v17  ;;  %p836_p7 = por %p835_p6, %p834_p5 }
  0x65   : > { %p837_p9 = pnand %p836_p7, %p830_p4 }
 0x135   : > { %v649_v6 = vpop.f32.mrb[0].mxu0 }
 0x136   : > { %v313_v7 = vpop.f32.mrb[1].mxu0  ;;  %v330_v9 = vmax.f32 %v649_v6, 0.0 }
 0x137   : > { %v650_v8 = vpop.f32.mrb[2].mxu0  ;;  %v328_v12 = vmax.f32 %v313_v7, 0.0 }
 0x138   : > { %v331_v10 = vmax.f32 %v650_v8, 0.0  ;;  %v316_v11 = vpop.f32.mrb[3].mxu0 }
 0x139   : > { %v329_v13 = vmax.f32 %v316_v11, 0.0 }
 0x13a   : > { %v337_v14 = vpack.c.bf16 %v331_v10, %v330_v9 }
 0x13b   : > { %v336_v15 = vpack.c.bf16 %v329_v13, %v328_v12 }
 0x13d   : > { %651 = vmatprep.subr.bf16.mxu1 %v336_v15 }
 0x13e   : > { %652 = vmatpush3.bf16.msra.mxu1 %v336_v15 }
 0x13f   : > { %653 = vmatprep.subr.bf16.mxu1 %v337_v14 }
 0x142   : > { %654 = vmatpush3.bf16.msra.mxu1 %v337_v14 }
 0x145   : > { %656 = vmatmul.mubr.msk.bf16.vlgmr.msra.gmra.mrb[0].mxu1 %vm348_vm2, %v768_v16 }
 0x218   : > { %v657_v18 = vpop.f32.mrb[0].mxu1 }
 0x219   : > { %v389_v19 = vpop.f32.mrb[1].mxu1  ;;  %v406_v21 = vmax.f32 %v657_v18, 0.0 }
 0x21a   : > { %v658_v20 = vpop.f32.mrb[2].mxu1  ;;  %v404_v24 = vmax.f32 %v389_v19, 0.0 }
 0x21b   : > { %v407_v22 = vmax.f32 %v658_v20, 0.0  ;;  %v392_v23 = vpop.f32.mrb[3].mxu1 }
 0x21c   : > { %v405_v25 = vmax.f32 %v392_v23, 0.0 }
 0x21d   : > { %v413_v26 = vpack.c.bf16 %v407_v22, %v406_v21 }
 0x21e   : > { %v412_v27 = vpack.c.bf16 %v405_v25, %v404_v24 }
 0x220   : > { %659 = vmatprep.subr.bf16.mxu0 %v412_v27 }
 0x221   : > { %660 = vmatpush3.bf16.msra.mxu0 %v412_v27 }
 0x222   : > { %661 = vmatprep.subr.bf16.mxu0 %v413_v26 }
 0x225   : > { %662 = vmatpush3.bf16.msra.mxu0 %v413_v26 }
 0x228   : > { %664 = vmatmul.mubr.msk.bf16.vlgmr.msra.gmra.mrb[4].mxu0 %vm348_vm2, %v770_v28 }
 0x2fb   : > { %v665_v29 = vpop.f32.mrb[4].mxu0 }
 0x2fc   : > { %v481_v30 = vmax.f32 %v665_v29, 0.0  ;;  %v464_v31 = vpop.f32.mrb[5].mxu0 }
 0x2fd   : > { %v479_v32 = vmax.f32 %v464_v31, 0.0  ;;  %v666_v33 = vpop.f32.mrb[6].mxu0 }
 0x2fe   : > { %485 = vst [vmem:[%s242_s14 + $0x10] sm:$0xff] %v481_v30  ;;  %v482_v34 = vmax.f32 %v666_v33, 0.0  ;;  %v467_v35 = vpop.f32.mrb[7].mxu0 }
 0x2ff   : > { %483 = vst [vmem:[%s242_s14] sm:$0xff] %v479_v32  ;;  %v480_v36 = vmax.f32 %v467_v35, 0.0 }
 0x300   : > { %486 = vst [vmem:[%s242_s14 + $0x18] sm:$0xff] %v482_v34 }
 0x301   : > { %484 = vst [vmem:[%s242_s14 + $0x8] sm:$0xff] %v480_v36 }
 0x302   : > { %840 = shalt.err (!%p837_p9)
}
 0x303   : > { %s841_s24 = scalar_lea.hbm %s1128_s18, 512  ;;  %s845_s27 = scalar_lea.hbm %s1186_s4, 2048 }
 0x304   : > { %p842_p11 = scmp.ne.s32.totalorder %s1128_s18, %s841_s24  ;;  %p846_p8 = scmp.lt.u32.totalorder %s1128_s18, %s1186_s4 }
 0x305   : > { %p847_p0 = scmp.lt.u32.totalorder %s845_s27, %s841_s24  ;;  %p849_p10 = scmp.lt.u32.totalorder %s841_s24, %s1128_s18 }
 0x306   : > { %p843_p13 = pnand %p842_p11, %p1206_p12 }
 0x307   : > { %p848_p2 = por %p847_p0, %p846_p8 }
 0x308   : > { %p844_p3 = pneg %p843_p13 }
 0x309   : > { %p850_p1 = por %p849_p10, %p848_p2 }
 0x30b   : > { %p851_p4 = pnand %p850_p1, %p844_p3 }
 0x30d   : > { %854 = shalt.err (!%p851_p4)
}
 0x30e   : > { %s936_s11 = smov 128   ;;  %s937_s25 = smov 256  }
 0x30f   : > { %s938_s14 = smov 8  }
 0x310   : > { %676 = dma.vmem_to_hbm [thread:$0]  (%p1206_p12), %s1123_s20, 512, %s1128_s18, %s1130_s7, %s936_s11, %s937_s25, %s938_s14  }
 0x311 PF: > { %p693_p5 = scmp.ge.s32.totalorder %s929_s22, 2  ;;  %s517_s21 = sand.u32 1, %s901_s15  }
 0x312   : > { %p1207_p6 = scmp.ne.s32.totalorder %s1200_s30, 0  ;;  %s518_s19 = scalar_lea.sflag [#allocation4], %s517_s21 }
 0x314   : > { %p686_p7 = pnand %p693_p5, %p1207_p6 }
 0x316   : > { %896 = dma.done.wait (!%p686_p7), %s518_s19, 512  }
 0x317   : > { %898 = vsyncadd (!%p686_p7), %s518_s19, 4294966784  ;;  %s19_s22 = sadd.s32 1, %s929_s22   ;;  %s1208_s18 = sld [smem:[#allocation11_spill]] }
 0x318   : > { %p16_p9 = scmp.ge.s32.totalorder %s19_s22, 6   ;;  %s1209_s19 = sld [smem:[#allocation12_spill]] }
 0x319   : > { %s1210_s20 = sld [smem:[#allocation13_spill]]  ;;  %s1211_s21 = sld [smem:[#allocation14_spill]] }
 0x31a   : > { %s1212_s15 = smov %s905_s16  ;;  %s1213_s16 = smov %s909_s17 }
 0x31b   : > { %s1214_s17 = smov %s1043_s9  ;;  %18 = sbr.rel (!%p16_p9) target bundleno = 7 (0x7), region = 80 }
 0x322   :  { %523 = vsyncpa [#allocation3], 1 }
 0x323   :  { %525 = vsyncpa [#allocation3 + $0x1], 1 }
 0x324   :  { %526 = vsyncpa [#allocation6], 1 }
 0x325   :  { %527 = vsyncpa [#allocation4], 1 }
 0x326   :  { %529 = vsyncpa [#allocation4 + $0x1], 1 }

</bundles_post_ra>
